<compile_context>
chip_gen: v7x
topology: tpu7x:2x2x1
jax: 0.10.0
libtpu: 0.0.40
codegen_flags: <defaults>
</compile_context>

<pallas_src>
import functools

import jax
import jax.numpy as jnp
from jax import lax
from jax.experimental import pallas as pl
from jax.experimental.pallas import tpu as pltpu


# ~4 MiB per input block => 2 inputs x 2 pipeline buffers ~= 16 MiB VMEM.
# Amortizes the ~0.35 us/grid-step overhead (matters most on v7x's fast HBM)
# while staying well inside every generation's VMEM once vmem_limit_bytes is
# raised explicitly (v5e scoped default is only 16 MiB).
_TARGET_BLOCK_BYTES = 4 * 1024 * 1024


def _round_up(x: int, m: int) -> int:
    return ((x + m - 1) // m) * m


def _min_sublane(dtype) -> int:
    itemsize = jnp.dtype(dtype).itemsize
    if itemsize >= 4:
        return 8
    if itemsize == 2:
        return 16
    return 32


def _cd_loss_kernel(s_ref, t_ref, o_ref, *, nc, rt, needs_mask):
    # diff of spatial means == spatial mean of diff; keep raw sums here and
    # fold 1/HW^2 and 1/NC into the epilogue scaling.
    d = s_ref[...].astype(jnp.float32) - t_ref[...].astype(jnp.float32)
    row_sum = jnp.sum(d, axis=1, keepdims=True)          # (rt, 1) lane reduce
    sq = row_sum * row_sum

    if needs_mask:
        i = pl.program_id(0)
        last = pl.num_programs(0) - 1

        # Only the final (partially out-of-bounds) block needs the validity
        # mask; every other block takes the mask-free path.
        @pl.when(i == last)
        def _masked_write():
            row_ids = i * rt + lax.broadcasted_iota(jnp.int32, (rt, 1), 0)
            o_ref[...] = jnp.where(row_ids < nc, sq, 0.0)

        @pl.when(i != last)
        def _plain_write():
            o_ref[...] = sq
    else:
        o_ref[...] = sq


def cd_loss(s: jax.Array, t: jax.Array) -> jax.Array:
    """Channel Distillation Loss. s, t: [N, C, H, W] (NCHW)."""
    assert s.shape == t.shape, "student/teacher shapes must match"
    N, C, H, W = s.shape
    NC, HW = N * C, H * W

    s2 = s.reshape(NC, HW)
    t2 = t.reshape(NC, HW)

    sublane = max(_min_sublane(s.dtype), _min_sublane(t.dtype))
    itemsize = max(jnp.dtype(s.dtype).itemsize, jnp.dtype(t.dtype).itemsize)
    row_bytes = HW * itemsize

    # Row tile: ~4 MiB per input block, a multiple of the dtype's sublane
    # packing, and no larger than the (sublane-rounded) total row count.
    rt_target = max(sublane,
                    (_TARGET_BLOCK_BYTES // max(row_bytes, 1)) // sublane * sublane)
    rt = min(rt_target, _round_up(NC, sublane))
    n_blocks = pl.cdiv(NC, rt)
    needs_mask = (NC % rt != 0)

    # Explicit VMEM budget: 2 inputs x 2 buffers x block + double-buffered
    # output + headroom.  Clamp to [32 MiB, 48 MiB]: above v5e's 16 MiB scoped
    # default, below v7x's per-core guidance.
    block_bytes = rt * HW * itemsize
    vmem_limit = 2 * 2 * block_bytes + 2 * rt * 4 + (4 << 20)
    vmem_limit = min(max(vmem_limit, 32 << 20), 48 << 20)

    out_rows = n_blocks * rt
    cost = pl.CostEstimate(
        flops=4 * NC * HW,
        transcendentals=0,
        bytes_accessed=2 * NC * HW * itemsize + out_rows * 4,
    )

    kernel = functools.partial(_cd_loss_kernel, nc=NC, rt=rt,
                               needs_mask=needs_mask)

    # Each grid step owns a distinct output block -> axis is truly parallel.
    # TODO(synk): on v7x, verify in xprof that this axis shards across both
    # TensorCores; switch to pltpu.CORE_PARALLEL if one core sits idle.
    partials = pl.pallas_call(
        kernel,
        out_shape=jax.ShapeDtypeStruct((out_rows, 1), jnp.float32),
        grid=(n_blocks,),
        in_specs=[
            pl.BlockSpec((rt, HW), lambda i: (i, 0)),
            pl.BlockSpec((rt, HW), lambda i: (i, 0)),
        ],
        out_specs=pl.BlockSpec((rt, 1), lambda i: (i, 0)),
        compiler_params=pltpu.CompilerParams(
            dimension_semantics=("parallel",),
            vmem_limit_bytes=int(vmem_limit)),
        cost_estimate=cost,
    )(s2, t2)

    # Epilogue: one tiny cross-row reduce + the 1/(NC * HW^2) scaling.
    scale = 1.0 / (float(NC) * float(HW) * float(HW))
    return jnp.sum(partials) * jnp.float32(scale)


def _ref_cd_loss(s, t):
    s_m = jnp.mean(s.astype(jnp.float32), axis=(2, 3))
    t_m = jnp.mean(t.astype(jnp.float32), axis=(2, 3))
    return jnp.mean((s_m - t_m) ** 2)


if __name__ == "__main__":
    key = jax.random.PRNGKey(0)
    k1, k2, k3, k4 = jax.random.split(key, 4)

    # Primary small test (shapes implied by the module).
    N, C, H, W = 2, 4, 16, 16
    s = jax.random.normal(k1, (N, C, H, W), dtype=jnp.float32)
    t = jax.random.normal(k2, (N, C, H, W), dtype=jnp.float32)
    loss = cd_loss(s, t)
    jax.block_until_ready(loss)
    ref = _ref_cd_loss(s, t)
    assert jnp.allclose(loss, ref, rtol=1e-4, atol=1e-6), (loss, ref)

    # Awkward shape: ragged row count + non-128 spatial -> exercises the
    # cdiv grid and the last-block row-mask path.
    N2, C2, H2, W2 = 3, 5, 7, 9
    s_b = jax.random.normal(k3, (N2, C2, H2, W2), dtype=jnp.float32)
    t_b = jax.random.normal(k4, (N2, C2, H2, W2), dtype=jnp.float32)
    loss_b = cd_loss(s_b, t_b)
    jax.block_until_ready(loss_b)
    ref_b = _ref_cd_loss(s_b, t_b)
    assert jnp.allclose(loss_b, ref_b, rtol=1e-4, atol=1e-6), (loss_b, ref_b)

    print("KERNEL_OK")
</pallas_src>

<mosaic_0001>
module attributes {stable_mosaic.version = 11 : i64} {
  func.func @_cd_loss_kernel(%arg0: i32, %arg1: memref<8x256xf32, #tpu.memory_space<vmem>>, %arg2: memref<8x256xf32, #tpu.memory_space<vmem>>, %arg3: memref<8x1xf32, #tpu.memory_space<vmem>>) attributes {dimension_semantics = [#tpu.dimension_semantics<parallel>], iteration_bounds = array<i64: 1>, scalar_prefetch = 0 : i64, scratch_operands = 0 : i64, tpu.core_type = #tpu.core_type<tc>, window_params = [{transform_indices = @transform_0, window_bounds = array<i64: 8, 256>}, {transform_indices = @transform_1, window_bounds = array<i64: 8, 256>}, {transform_indices = @transform_2, window_bounds = array<i64: 8, 1>}]} {
    %c0 = arith.constant 0 : index
    %c0_0 = arith.constant 0 : index
    %0 = vector.load %arg1[%c0, %c0_0] : memref<8x256xf32, #tpu.memory_space<vmem>>, vector<8x256xf32>
    %c0_1 = arith.constant 0 : index
    %c0_2 = arith.constant 0 : index
    %1 = vector.load %arg2[%c0_1, %c0_2] : memref<8x256xf32, #tpu.memory_space<vmem>>, vector<8x256xf32>
    %2 = arith.subf %0, %1 : vector<8x256xf32>
    %cst = arith.constant dense<0.000000e+00> : vector<8xf32>
    %3 = vector.multi_reduction <add>, %2, %cst [1] : vector<8x256xf32> to vector<8xf32>
    %4 = vector.shape_cast %3 : vector<8xf32> to vector<8x1xf32>
    %5 = arith.mulf %4, %4 : vector<8x1xf32>
    %c0_3 = arith.constant 0 : index
    %c0_4 = arith.constant 0 : index
    %6 = vector.load %arg3[%c0_3, %c0_4] : memref<8x1xf32, #tpu.memory_space<vmem>>, vector<8x1xf32>
    tpu.vector_store %arg3[%c0_3, %c0_4], %5 {strides = array<i32>} : memref<8x1xf32, #tpu.memory_space<vmem>>, vector<8x1xf32>,
    return
  }
  func.func @transform_0(%arg0: i32) -> (i32, i32) {
    %c0_i32 = arith.constant 0 : i32
    %c0_i32_0 = arith.constant 0 : i32
    return %arg0, %c0_i32 : i32, i32
  }
  func.func @transform_1(%arg0: i32) -> (i32, i32) {
    %c0_i32 = arith.constant 0 : i32
    %c0_i32_0 = arith.constant 0 : i32
    return %arg0, %c0_i32 : i32, i32
  }
  func.func @transform_2(%arg0: i32) -> (i32, i32) {
    %c0_i32 = arith.constant 0 : i32
    %c0_i32_0 = arith.constant 0 : i32
    return %arg0, %c0_i32 : i32, i32
  }
}

</mosaic_0001>

<bundles_post_ra>
// kernel: tpu_custom_call.1
= control target key start
LH: loop header
LB: loop body
LE: loop exit
PB: predicated region body
PF: predicated region fallthrough
CT: control target
= control target key end

     0   :  { %7 = vsyncpa [#allocation3], 0  ;;  %s147_s0 = inlined_call_operand.hbm [shape: f32[8,256], index: 0, kind: input, shape index: {}]   ;;  %s148_s1 = inlined_call_operand.hbm [shape: f32[8,256], index: 1, kind: input, shape index: {}]   ;;  %s149_s2 = inlined_call_operand.vmem [shape: f32[8,1], index: 2, kind: output, shape index: {}]  }
   0x1   :  { %8 = vsyncpa [#allocation5], 0  ;;  %s103_s9 = smov [#allocation2]   ;;  %s104_s11 = smov [#allocation4]  }
   0x2   :  { %s15_s10 = sshll.u32 %s103_s9, 4  ;;  %s25_s12 = sshll.u32 %s104_s11, 4  ;;  %s16_s10 = int_to_ptr.vmem [resolvable:$true] %s15_s10  ;;  %s26_s12 = int_to_ptr.vmem [resolvable:$true] %s25_s12 }
   0x3   :  { %s55_s15 = scalar_lea.hbm %s147_s0, 256 }
   0x4   :  { %p56_p0 = scmp.ne.s32.totalorder %s147_s0, %s55_s15  ;;  %p59_p1 = scmp.lt.u32.totalorder %s55_s15, %s147_s0 }
   0x6   :  { %p61_p2 = pnand %p59_p1, %p56_p0 }
   0x8   :  { %64 = shalt.err (!%p61_p2)
}
   0x9   :  { %s65_s20 = scalar_lea.vmem %s16_s10, 256  ;;  %p70_p4 = scmp.lt.s32.totalorder %s16_s10, %s16_s10 }
   0xa   :  { %p66_p3 = scmp.ne.s32.totalorder %s16_s10, %s65_s20  ;;  %p71_p5 = scmp.lt.s32.totalorder %s65_s20, %s65_s20 }
   0xc   :  { %p72_p6 = por %p71_p5, %p70_p4 }
   0xe   :  { %p73_p7 = pnand %p72_p6, %p66_p3 }
  0x10   :  { %76 = shalt.err (!%p73_p7)
}
  0x11   :  { %18 = dma.hbm_to_vmem [thread:$0]  %s147_s0, 256, %s16_s10, [#allocation3]  }
  0x12   :  { %s77_s25 = scalar_lea.hbm %s148_s1, 256 }
  0x13   :  { %p78_p8 = scmp.ne.s32.totalorder %s148_s1, %s77_s25  ;;  %p81_p9 = scmp.lt.u32.totalorder %s77_s25, %s148_s1 }
  0x15   :  { %p83_p10 = pnand %p81_p9, %p78_p8 }
  0x17   :  { %86 = shalt.err (!%p83_p10)
}
  0x18   :  { %s87_s30 = scalar_lea.vmem %s26_s12, 256  ;;  %p92_p12 = scmp.lt.s32.totalorder %s26_s12, %s26_s12 }
  0x19   :  { %p88_p11 = scmp.ne.s32.totalorder %s26_s12, %s87_s30  ;;  %p93_p13 = scmp.lt.s32.totalorder %s87_s30, %s87_s30 }
  0x1b   :  { %p94_p0 = por %p93_p13, %p92_p12 }
  0x1d   :  { %p95_p1 = pnand %p94_p0, %p88_p11 }
  0x1f   :  { %98 = shalt.err (!%p95_p1)
}
  0x20   :  { %28 = dma.hbm_to_vmem [thread:$0]  %s148_s1, 256, %s26_s12, [#allocation5]  }
  0x21   :  { %99 = dma.done.wait [#allocation3], 256  }
  0x22   :  { %100 = vsyncadd [#allocation3], 4294967040 }
  0x23   :  { %101 = dma.done.wait [#allocation5], 256  }
  0x24   :  { %102 = vsyncadd [#allocation5], 4294967040  ;;  %v35_v0 = vld [vmem:[#allocation2] sm:$0xff]  ;;  %v36_v1 = vld [vmem:[#allocation2 + $0x8] sm:$0xff]  ;;  %vm45_vm0 = vcmask 7168  }
  0x25   :  { %v37_v2 = vld [vmem:[#allocation4] sm:$0xff]  ;;  %v38_v3 = vld [vmem:[#allocation4 + $0x8] sm:$0xff] }
  0x26   :  { %v39_v4 = vsub.f32 %v35_v0, %v37_v2  ;;  %v40_v5 = vsub.f32 %v36_v1, %v38_v3 }
  0x28   :  { %v41_v6 = vadd.f32 %v40_v5, %v39_v4 }
  0x2a   :  { %42 = vadd.xlane.f32.xlu0 %v41_v6 }
  0xb7   :  { %v43_v7 = vpop.xlane.xlu0 %42 }
  0xb8   :  { %v44_v8 = vmul.f32 %v43_v7, %v43_v7 }
  0xba   :  { %46 = vst.msk [vmem:[%s149_s2] sm:$0xff] %vm45_vm0, %v44_v8 }
  0xbb   :  { %51 = vsyncpa [#allocation3], 1 }
  0xbc   :  { %52 = vsyncpa [#allocation5], 1 }

</bundles_post_ra>
